<compile_context>
chip_gen: v7x
topology: tpu7x:2x2x1
jax: 0.10.0
libtpu: 0.0.40
codegen_flags: <defaults>
</compile_context>

<pallas_src>
import functools
import math

import jax
import jax.numpy as jnp
import numpy as np
from jax.experimental import pallas as pl
from jax.experimental.pallas import tpu as pltpu


def _bert_attention_kernel(
    xq_ref,     # (1, TQ, H) bf16 query tile (also residual input, upcast in epilogue)
    x_ref,      # (1, S, H)  bf16 full sequence (K/V projection, read only at qi==0)
    mask_ref,   # (1, 1, S)  f32 additive attention mask
    wq_ref,     # (1, H, GD) bf16, pre-scaled by 1/sqrt(dH)
    bq_ref,     # (1, 1, GD) f32, pre-scaled by 1/sqrt(dH)
    wkv_ref,    # (1, H, 2*GD) bf16  ([Wk_group | Wv_group])
    bkv_ref,    # (1, 1, 2*GD) f32
    wo_ref,     # (1, GD, H) bf16
    bo_ref,     # (1, H) f32
    gamma_ref, beta_ref,   # (1, H) f32
    o_ref,      # (1, TQ, H) output tile
    k_scr,      # (NHG, S, GD) bf16 scratch: per-group projected K
    v_scr,      # (NHG, S, GD) bf16 scratch: per-group projected V
    acc_ref,    # (TQ, H) f32 scratch: output-projection accumulator
    *, eps, heads_per_group, head_dim,
):
    qi = pl.program_id(1)
    g = pl.program_id(2)
    num_groups = pl.num_programs(2)
    gd = heads_per_group * head_dim

    x_q = xq_ref[0]                                      # (TQ, H) bf16

    # --- fused K/V projection for this head group: once per (batch, group),
    #     cached in VMEM scratch across all query tiles.
    #     (Relies on the qi / head-group grid axes staying "arbitrary".) ---
    @pl.when(qi == 0)
    def _():
        kv = jnp.dot(x_ref[0], wkv_ref[0],
                     preferred_element_type=jnp.float32) + bkv_ref[0]   # (S, 2*GD)
        k_scr[g] = kv[:, :gd].astype(jnp.bfloat16)
        v_scr[g] = kv[:, gd:].astype(jnp.bfloat16)

    # --- Q projection for the whole head group (wq/bq carry the 1/sqrt(dH) scale) ---
    q = jnp.dot(x_q, wq_ref[0], preferred_element_type=jnp.float32) + bq_ref[0]
    q = q.astype(jnp.bfloat16)                           # (TQ, GD)

    kg = k_scr[g]                                        # (S, GD) bf16
    vg = v_scr[g]                                        # (S, GD) bf16
    mask = mask_ref[0]                                   # (1, S), broadcasts over rows

    # --- per-head scaled dot-product attention within the group (static unroll) ---
    ctx_parts = []
    for hi in range(heads_per_group):
        sl = slice(hi * head_dim, (hi + 1) * head_dim)
        q_h = q[:, sl]                                   # (TQ, dH)
        k_h = kg[:, sl]                                  # (S, dH)
        v_h = vg[:, sl]                                  # (S, dH)
        s = jax.lax.dot_general(                         # contract head_dim directly
            q_h, k_h, dimension_numbers=(((1,), (1,)), ((), ())),
            preferred_element_type=jnp.float32)          # (TQ, S)
        s = s + mask
        s = s - jnp.max(s, axis=-1, keepdims=True)
        p = jnp.exp(s)
        p = p * pl.reciprocal(jnp.sum(p, axis=-1, keepdims=True), approx=True)
        # attention-prob dropout: identity in eval mode
        ctx_parts.append(jnp.dot(p.astype(jnp.bfloat16), v_h,
                                 preferred_element_type=jnp.float32))
    ctx = jnp.concatenate(ctx_parts, axis=-1).astype(jnp.bfloat16)   # (TQ, GD)

    # --- accumulate this head-group's slice of the output projection
    #     (K = GD -> full MXU depth when GD >= 256) ---
    @pl.when(g == 0)
    def _():
        acc_ref[...] = jnp.zeros_like(acc_ref)

    acc_ref[...] += jnp.dot(ctx, wo_ref[0], preferred_element_type=jnp.float32)

    # --- BertMixSelfOutput: +bias, dropout(id), residual (ratio=None), LayerNorm ---
    @pl.when(g == num_groups - 1)
    def _():
        out = acc_ref[...] + bo_ref[...]
        resid = out + x_q.astype(jnp.float32)
        mean = jnp.mean(resid, axis=-1, keepdims=True)
        var = jnp.mean(jnp.square(resid - mean), axis=-1, keepdims=True)
        normed = (resid - mean) * jax.lax.rsqrt(var + eps)
        o_ref[0] = (normed * gamma_ref[...] + beta_ref[...]).astype(o_ref.dtype)


def _vmem_capacity_bytes():
    try:
        return int(pltpu.get_tpu_info().vmem_capacity_bytes)
    except Exception:
        return 64 * 1024 * 1024   # conservative (v7x-sized) fallback


def _pick_q_tile(S, vmem_cap):
    # Bigger tiles amortize per-step overhead & weight re-DMA; 512 target on
    # 128-MiB VMEM parts (v5e/v6e), 256 on v7x (64 MiB).
    target = 512 if vmem_cap >= 96 * 1024 * 1024 else 256
    if S <= target:
        return S
    for cand in range(target, 15, -16):
        if S % cand == 0:
            return cand
    for cand in range(target, 7, -8):
        if S % cand == 0:
            return cand
    return S


def _pick_head_group(num_heads, head_dim, target_lanes=256, max_group=8):
    g = max(1, min(num_heads, target_lanes // max(head_dim, 1), max_group))
    while num_heads % g:
        g -= 1
    return g


def bert_attention(hidden_states, attention_mask, params, *, num_heads, eps=1e-12,
                   block_q=None):
    """hidden_states: (B, S, H) f32; attention_mask: (B, 1, S) additive f32."""
    B, S, H = hidden_states.shape
    dH = H // num_heads
    assert num_heads * dH == H

    vmem_cap = _vmem_capacity_bytes()

    if block_q is None:
        TQ = _pick_q_tile(S, vmem_cap)
    else:
        assert S % block_q == 0 and (block_q % 8 == 0 or block_q == S), \
            "block_q must divide S and be a multiple of 8 (sublane)"
        TQ = block_q
    NQ = S // TQ

    G = _pick_head_group(num_heads, dH)    # heads per grid step
    NHG = num_heads // G
    GD = G * dH
    scale = 1.0 / math.sqrt(dH)

    f32, bf16 = jnp.float32, jnp.bfloat16

    # Host-side weight preprocessing: head-GROUP-major layouts + bf16 cast +
    # folded softmax scale + fused K/V weight block.
    wq3 = (params["wq"].astype(f32) * scale).reshape(H, NHG, GD) \
        .transpose(1, 0, 2).astype(bf16)                              # (NHG, H, GD)
    wk3 = params["wk"].astype(f32).reshape(H, NHG, GD)
    wv3 = params["wv"].astype(f32).reshape(H, NHG, GD)
    wkv3 = jnp.concatenate([wk3, wv3], axis=-1).transpose(1, 0, 2).astype(bf16)  # (NHG,H,2GD)
    wo3 = params["wo"].astype(f32).reshape(NHG, GD, H).astype(bf16)   # (NHG, GD, H)
    bq3 = (params["bq"].astype(f32) * scale).reshape(NHG, 1, GD)
    bkv3 = jnp.concatenate([params["bk"].astype(f32).reshape(NHG, GD),
                            params["bv"].astype(f32).reshape(NHG, GD)],
                           axis=-1)[:, None, :]                       # (NHG, 1, 2GD)
    bo = params["bo"].astype(f32).reshape(1, H)
    gamma = params["gamma"].astype(f32).reshape(1, H)
    beta = params["beta"].astype(f32).reshape(1, H)

    # hidden_states in bf16: halves the largest HBM read and the resident x
    # block in VMEM; residual/LayerNorm are upcast to f32 inside the kernel.
    x_bf = hidden_states.astype(bf16)
    mask_f32 = attention_mask.astype(f32)

    kernel = functools.partial(_bert_attention_kernel, eps=eps,
                               heads_per_group=G, head_dim=dH)

    group_map = lambda b, qi, g: (g, 0, 0)
    rep2 = lambda b, qi, g: (0, 0)

    grid_spec = pltpu.PrefetchScalarGridSpec(
        num_scalar_prefetch=0,
        grid=(B, NQ, NHG),
        in_specs=[
            pl.BlockSpec((1, TQ, H), lambda b, qi, g: (b, qi, 0)),  # query tile (bf16)
            pl.BlockSpec((1, S, H), lambda b, qi, g: (b, 0, 0)),    # full x for K/V proj
            pl.BlockSpec((1, 1, S), lambda b, qi, g: (b, 0, 0)),    # attention_mask
            pl.BlockSpec((1, H, GD), group_map),                    # Wq (group slice)
            pl.BlockSpec((1, 1, GD), group_map),                    # bq
            pl.BlockSpec((1, H, 2 * GD), group_map),                # Wkv (fused)
            pl.BlockSpec((1, 1, 2 * GD), group_map),                # bkv
            pl.BlockSpec((1, GD, H), group_map),                    # Wo (group slice)
            pl.BlockSpec((1, H), rep2),                             # bo
            pl.BlockSpec((1, H), rep2),                             # gamma
            pl.BlockSpec((1, H), rep2),                             # beta
        ],
        out_specs=pl.BlockSpec((1, TQ, H), lambda b, qi, g: (b, qi, 0)),
        scratch_shapes=[
            pltpu.VMEM((NHG, S, GD), bf16),   # projected K cache
            pltpu.VMEM((NHG, S, GD), bf16),   # projected V cache
            pltpu.VMEM((TQ, H), f32),         # output-projection accumulator
        ],
    )

    # VMEM budget: double-buffered per-step IO + persistent scratch + headroom
    # for in-kernel intermediates (no double counting), capped at 75% of the
    # physical VMEM of the current generation (~48 MiB on v7x, ~96 MiB v5e/v6e).
    out_itemsize = np.dtype(hidden_states.dtype).itemsize
    per_step_io = (TQ * H * 2              # query tile (bf16)
                   + S * H * 2             # full x (bf16)
                   + S * 4                 # mask
                   + H * GD * 2 + GD * 4   # Wq + bq
                   + H * 2 * GD * 2 + 2 * GD * 4   # Wkv + bkv
                   + GD * H * 2            # Wo
                   + 3 * H * 4             # bo, gamma, beta
                   + TQ * H * out_itemsize)
    scratch_bytes = 2 * NHG * S * GD * 2 + TQ * H * 4
    intermediates = (S * 2 * GD * 4        # fused KV projection (f32)
                     + 2 * TQ * GD * 4     # q / ctx
                     + 3 * TQ * S * 4      # scores / probs
                     + 4 * TQ * H * 4)     # epilogue temporaries
    vmem_needed = 2 * per_step_io + scratch_bytes + intermediates
    vmem_limit = int(min(max(int(1.5 * vmem_needed), 32 * 1024 * 1024),
                         int(0.75 * vmem_cap)))

    return pl.pallas_call(
        kernel,
        out_shape=jax.ShapeDtypeStruct((B, S, H), hidden_states.dtype),
        grid_spec=grid_spec,
        compiler_params=pltpu.CompilerParams(
            # batch axis parallel (megacore); the q-tile and head-group axes
            # carry state in VMEM scratch (K/V cache, output accumulator) so
            # they MUST remain "arbitrary".
            dimension_semantics=("parallel", "arbitrary", "arbitrary"),
            vmem_limit_bytes=vmem_limit,
        ),
    )(x_bf, x_bf, mask_f32,
      wq3, bq3, wkv3, bkv3, wo3, bo, gamma, beta)


def _reference(hidden_states, attention_mask, params, *, num_heads, eps=1e-12):
    B, S, H = hidden_states.shape
    dH = H // num_heads
    x = hidden_states
    q = x @ params["wq"] + params["bq"]
    k = x @ params["wk"] + params["bk"]
    v = x @ params["wv"] + params["bv"]
    q = q.reshape(B, S, num_heads, dH).transpose(0, 2, 1, 3)
    k = k.reshape(B, S, num_heads, dH).transpose(0, 2, 1, 3)
    v = v.reshape(B, S, num_heads, dH).transpose(0, 2, 1, 3)
    scores = jnp.einsum("bhqd,bhkd->bhqk", q, k) / math.sqrt(dH)
    scores = scores + attention_mask[:, None, :, :]
    p = jax.nn.softmax(scores, axis=-1)
    ctx = jnp.einsum("bhqk,bhkd->bhqd", p, v).transpose(0, 2, 1, 3).reshape(B, S, H)
    out = ctx @ params["wo"] + params["bo"]
    resid = out + x
    mean = jnp.mean(resid, axis=-1, keepdims=True)
    var = jnp.mean((resid - mean) ** 2, axis=-1, keepdims=True)
    return (resid - mean) * jax.lax.rsqrt(var + eps) * params["gamma"] + params["beta"]


if __name__ == "__main__":
    B, S, H, NH = 2, 8, 32, 4

    key = jax.random.PRNGKey(0)
    keys = jax.random.split(key, 12)
    scale = 0.05
    params = {
        "wq": scale * jax.random.normal(keys[0], (H, H), jnp.float32),
        "bq": scale * jax.random.normal(keys[1], (1, H), jnp.float32),
        "wk": scale * jax.random.normal(keys[2], (H, H), jnp.float32),
        "bk": scale * jax.random.normal(keys[3], (1, H), jnp.float32),
        "wv": scale * jax.random.normal(keys[4], (H, H), jnp.float32),
        "bv": scale * jax.random.normal(keys[5], (1, H), jnp.float32),
        "wo": scale * jax.random.normal(keys[6], (H, H), jnp.float32),
        "bo": scale * jax.random.normal(keys[7], (1, H), jnp.float32),
        "gamma": jnp.ones((1, H), jnp.float32),
        "beta": jnp.zeros((1, H), jnp.float32),
    }

    hidden_states = jax.random.normal(keys[8], (B, S, H), jnp.float32)
    # additive mask: last two key positions of batch 1 masked out
    mask = jnp.zeros((B, 1, S), jnp.float32)
    mask = mask.at[1, 0, -2:].set(-10000.0)

    out = bert_attention(hidden_states, mask, params, num_heads=NH)
    out = jax.block_until_ready(out)

    ref = _reference(hidden_states, mask, params, num_heads=NH)
    # bf16 activations/weights on the MXU + approx reciprocal -> loose tolerance.
    np.testing.assert_allclose(np.asarray(out), np.asarray(ref), rtol=2e-2, atol=2e-2)

    print("KERNEL_OK")
</pallas_src>

<mosaic_0001>
module attributes {stable_mosaic.version = 11 : i64} {
  func.func @_bert_attention_kernel(%arg0: i32, %arg1: i32, %arg2: i32, %arg3: memref<1x8x32xbf16, #tpu.memory_space<vmem>>, %arg4: memref<1x8x32xbf16, #tpu.memory_space<vmem>>, %arg5: memref<1x1x8xf32, #tpu.memory_space<vmem>>, %arg6: memref<1x32x32xbf16, #tpu.memory_space<vmem>>, %arg7: memref<1x1x32xf32, #tpu.memory_space<vmem>>, %arg8: memref<1x32x64xbf16, #tpu.memory_space<vmem>>, %arg9: memref<1x1x64xf32, #tpu.memory_space<vmem>>, %arg10: memref<1x32x32xbf16, #tpu.memory_space<vmem>>, %arg11: memref<1x32xf32, #tpu.memory_space<vmem>>, %arg12: memref<1x32xf32, #tpu.memory_space<vmem>>, %arg13: memref<1x32xf32, #tpu.memory_space<vmem>>, %arg14: memref<1x8x32xf32, #tpu.memory_space<vmem>>, %arg15: memref<1x8x32xbf16, #tpu.memory_space<vmem>>, %arg16: memref<1x8x32xbf16, #tpu.memory_space<vmem>>, %arg17: memref<8x32xf32, #tpu.memory_space<vmem>>) attributes {dimension_semantics = [#tpu.dimension_semantics<parallel>, #tpu.dimension_semantics<arbitrary>, #tpu.dimension_semantics<arbitrary>], iteration_bounds = array<i64: 2, 1, 1>, scalar_prefetch = 0 : i64, scratch_operands = 3 : i64, tpu.core_type = #tpu.core_type<tc>, window_params = [{transform_indices = @transform_0, window_bounds = array<i64: 1, 8, 32>}, {transform_indices = @transform_1, window_bounds = array<i64: 1, 8, 32>}, {transform_indices = @transform_2, window_bounds = array<i64: 1, 1, 8>}, {transform_indices = @transform_3, window_bounds = array<i64: 1, 32, 32>}, {transform_indices = @transform_4, window_bounds = array<i64: 1, 1, 32>}, {transform_indices = @transform_5, window_bounds = array<i64: 1, 32, 64>}, {transform_indices = @transform_6, window_bounds = array<i64: 1, 1, 64>}, {transform_indices = @transform_7, window_bounds = array<i64: 1, 32, 32>}, {pipeline_mode = #tpu.pipeline_mode<synchronous>, transform_indices = @transform_8, window_bounds = array<i64: 1, 32>}, {pipeline_mode = #tpu.pipeline_mode<synchronous>, transform_indices = @transform_9, window_bounds = array<i64: 1, 32>}, {pipeline_mode = #tpu.pipeline_mode<synchronous>, transform_indices = @transform_10, window_bounds = array<i64: 1, 32>}, {transform_indices = @transform_11, window_bounds = array<i64: 1, 8, 32>}]} {
    %c0 = arith.constant 0 : index
    %c0_0 = arith.constant 0 : index
    %c0_1 = arith.constant 0 : index
    %0 = vector.load %arg3[%c0, %c0_0, %c0_1] : memref<1x8x32xbf16, #tpu.memory_space<vmem>>, vector<1x8x32xbf16>
    %1 = vector.shape_cast %0 : vector<1x8x32xbf16> to vector<8x32xbf16>
    %c0_i32 = arith.constant 0 : i32
    %2 = arith.cmpi eq, %arg1, %c0_i32 : i32
    %3 = arith.extui %2 : i1 to i32
    %c0_i32_2 = arith.constant 0 : i32
    %4 = arith.cmpi ne, %3, %c0_i32_2 : i32
    scf.if %4 {
      %c0_44 = arith.constant 0 : index
      %c0_45 = arith.constant 0 : index
      %c0_46 = arith.constant 0 : index
      %107 = vector.load %arg4[%c0_44, %c0_45, %c0_46] : memref<1x8x32xbf16, #tpu.memory_space<vmem>>, vector<1x8x32xbf16>
      %108 = vector.shape_cast %107 : vector<1x8x32xbf16> to vector<8x32xbf16>
      %c0_47 = arith.constant 0 : index
      %c0_48 = arith.constant 0 : index
      %c0_49 = arith.constant 0 : index
      %109 = vector.load %arg8[%c0_47, %c0_48, %c0_49] : memref<1x32x64xbf16, #tpu.memory_space<vmem>>, vector<1x32x64xbf16>
      %110 = vector.shape_cast %109 : vector<1x32x64xbf16> to vector<32x64xbf16>
      %cst_50 = arith.constant dense<0.000000e+00> : vector<8x64xf32>
      %111 = tpu.matmul %108, %110, %cst_50 {dimension_numbers = #tpu.dot_dimension_numbers<[1], [0], [0], [1], [0, 0, 1, 1], [], []>} : vector<8x32xbf16>, vector<32x64xbf16>, vector<8x64xf32> -> vector<8x64xf32>
      %c0_51 = arith.constant 0 : index
      %c0_52 = arith.constant 0 : index
      %c0_53 = arith.constant 0 : index
      %112 = vector.load %arg9[%c0_51, %c0_52, %c0_53] : memref<1x1x64xf32, #tpu.memory_space<vmem>>, vector<1x1x64xf32>
      %113 = vector.shape_cast %112 : vector<1x1x64xf32> to vector<1x64xf32>
      %114 = vector.broadcast %113 : vector<1x64xf32> to vector<8x64xf32>
      %115 = arith.addf %111, %114 : vector<8x64xf32>
      %116 = vector.extract_strided_slice %115 {offsets = [0, 0], sizes = [8, 32], strides = [1, 1]} : vector<8x64xf32> to vector<8x32xf32>
      %117 = arith.truncf %116 : vector<8x32xf32> to vector<8x32xbf16>
      %118 = arith.index_cast %arg2 : i32 to index
      %c0_54 = arith.constant 0 : index
      %c0_55 = arith.constant 0 : index
      %119 = vector.load %arg15[%118, %c0_54, %c0_55] : memref<1x8x32xbf16, #tpu.memory_space<vmem>>, vector<1x8x32xbf16>
      %120 = vector.shape_cast %119 : vector<1x8x32xbf16> to vector<8x32xbf16>
      %121 = vector.shape_cast %117 : vector<8x32xbf16> to vector<1x8x32xbf16>
      tpu.vector_store %arg15[%118, %c0_54, %c0_55], %121 {strides = array<i32>} : memref<1x8x32xbf16, #tpu.memory_space<vmem>>, vector<1x8x32xbf16>,
      %122 = vector.extract_strided_slice %115 {offsets = [0, 32], sizes = [8, 32], strides = [1, 1]} : vector<8x64xf32> to vector<8x32xf32>
      %123 = arith.truncf %122 : vector<8x32xf32> to vector<8x32xbf16>
      %124 = arith.index_cast %arg2 : i32 to index
      %c0_56 = arith.constant 0 : index
      %c0_57 = arith.constant 0 : index
      %125 = vector.load %arg16[%124, %c0_56, %c0_57] : memref<1x8x32xbf16, #tpu.memory_space<vmem>>, vector<1x8x32xbf16>
      %126 = vector.shape_cast %125 : vector<1x8x32xbf16> to vector<8x32xbf16>
      %127 = vector.shape_cast %123 : vector<8x32xbf16> to vector<1x8x32xbf16>
      tpu.vector_store %arg16[%124, %c0_56, %c0_57], %127 {strides = array<i32>} : memref<1x8x32xbf16, #tpu.memory_space<vmem>>, vector<1x8x32xbf16>,
    } else {
    }
    %c0_3 = arith.constant 0 : index
    %c0_4 = arith.constant 0 : index
    %c0_5 = arith.constant 0 : index
    %5 = vector.load %arg6[%c0_3, %c0_4, %c0_5] : memref<1x32x32xbf16, #tpu.memory_space<vmem>>, vector<1x32x32xbf16>
    %6 = vector.shape_cast %5 : vector<1x32x32xbf16> to vector<32x32xbf16>
    %cst = arith.constant dense<0.000000e+00> : vector<8x32xf32>
    %7 = tpu.matmul %1, %6, %cst {dimension_numbers = #tpu.dot_dimension_numbers<[1], [0], [0], [1], [0, 0, 1, 1], [], []>} : vector<8x32xbf16>, vector<32x32xbf16>, vector<8x32xf32> -> vector<8x32xf32>
    %c0_6 = arith.constant 0 : index
    %c0_7 = arith.constant 0 : index
    %c0_8 = arith.constant 0 : index
    %8 = vector.load %arg7[%c0_6, %c0_7, %c0_8] : memref<1x1x32xf32, #tpu.memory_space<vmem>>, vector<1x1x32xf32>
    %9 = vector.shape_cast %8 : vector<1x1x32xf32> to vector<1x32xf32>
    %10 = vector.broadcast %9 : vector<1x32xf32> to vector<8x32xf32>
    %11 = arith.addf %7, %10 : vector<8x32xf32>
    %12 = arith.truncf %11 : vector<8x32xf32> to vector<8x32xbf16>
    %13 = arith.index_cast %arg2 : i32 to index
    %c0_9 = arith.constant 0 : index
    %c0_10 = arith.constant 0 : index
    %14 = vector.load %arg15[%13, %c0_9, %c0_10] : memref<1x8x32xbf16, #tpu.memory_space<vmem>>, vector<1x8x32xbf16>
    %15 = vector.shape_cast %14 : vector<1x8x32xbf16> to vector<8x32xbf16>
    %16 = arith.index_cast %arg2 : i32 to index
    %c0_11 = arith.constant 0 : index
    %c0_12 = arith.constant 0 : index
    %17 = vector.load %arg16[%16, %c0_11, %c0_12] : memref<1x8x32xbf16, #tpu.memory_space<vmem>>, vector<1x8x32xbf16>
    %18 = vector.shape_cast %17 : vector<1x8x32xbf16> to vector<8x32xbf16>
    %c0_13 = arith.constant 0 : index
    %c0_14 = arith.constant 0 : index
    %c0_15 = arith.constant 0 : index
    %19 = vector.load %arg5[%c0_13, %c0_14, %c0_15] : memref<1x1x8xf32, #tpu.memory_space<vmem>>, vector<1x1x8xf32>
    %20 = vector.shape_cast %19 : vector<1x1x8xf32> to vector<1x8xf32>
    %21 = vector.extract_strided_slice %12 {offsets = [0, 0], sizes = [8, 8], strides = [1, 1]} : vector<8x32xbf16> to vector<8x8xbf16>
    %22 = vector.extract_strided_slice %15 {offsets = [0, 0], sizes = [8, 8], strides = [1, 1]} : vector<8x32xbf16> to vector<8x8xbf16>
    %23 = vector.extract_strided_slice %18 {offsets = [0, 0], sizes = [8, 8], strides = [1, 1]} : vector<8x32xbf16> to vector<8x8xbf16>
    %cst_16 = arith.constant dense<0.000000e+00> : vector<8x8xf32>
    %24 = tpu.matmul %21, %22, %cst_16 {dimension_numbers = #tpu.dot_dimension_numbers<[1], [1], [0], [0], [0, 0, 1, 0], [], []>} : vector<8x8xbf16>, vector<8x8xbf16>, vector<8x8xf32> -> vector<8x8xf32>
    %25 = vector.broadcast %20 : vector<1x8xf32> to vector<8x8xf32>
    %26 = arith.addf %24, %25 : vector<8x8xf32>
    %cst_17 = arith.constant dense<0xFF800000> : vector<8xf32>
    %27 = vector.multi_reduction <maximumf>, %26, %cst_17 [1] : vector<8x8xf32> to vector<8xf32>
    %28 = vector.shape_cast %27 : vector<8xf32> to vector<8x1xf32>
    %29 = vector.broadcast %28 : vector<8x1xf32> to vector<8x8xf32>
    %30 = arith.subf %26, %29 : vector<8x8xf32>
    %31 = math.exp %30 : vector<8x8xf32>
    %cst_18 = arith.constant dense<0.000000e+00> : vector<8xf32>
    %32 = vector.multi_reduction <add>, %31, %cst_18 [1] : vector<8x8xf32> to vector<8xf32>
    %33 = vector.shape_cast %32 : vector<8xf32> to vector<8x1xf32>
    %34 = tpu.reciprocal %33 {approx = true} : vector<8x1xf32> -> vector<8x1xf32>
    %35 = vector.broadcast %34 : vector<8x1xf32> to vector<8x8xf32>
    %36 = arith.mulf %31, %35 : vector<8x8xf32>
    %37 = arith.truncf %36 : vector<8x8xf32> to vector<8x8xbf16>
    %cst_19 = arith.constant dense<0.000000e+00> : vector<8x8xf32>
    %38 = tpu.matmul %37, %23, %cst_19 {dimension_numbers = #tpu.dot_dimension_numbers<[1], [0], [0], [1], [0, 0, 1, 1], [], []>} : vector<8x8xbf16>, vector<8x8xbf16>, vector<8x8xf32> -> vector<8x8xf32>
    %39 = vector.extract_strided_slice %12 {offsets = [0, 8], sizes = [8, 8], strides = [1, 1]} : vector<8x32xbf16> to vector<8x8xbf16>
    %40 = vector.extract_strided_slice %15 {offsets = [0, 8], sizes = [8, 8], strides = [1, 1]} : vector<8x32xbf16> to vector<8x8xbf16>
    %41 = vector.extract_strided_slice %18 {offsets = [0, 8], sizes = [8, 8], strides = [1, 1]} : vector<8x32xbf16> to vector<8x8xbf16>
    %cst_20 = arith.constant dense<0.000000e+00> : vector<8x8xf32>
    %42 = tpu.matmul %39, %40, %cst_20 {dimension_numbers = #tpu.dot_dimension_numbers<[1], [1], [0], [0], [0, 0, 1, 0], [], []>} : vector<8x8xbf16>, vector<8x8xbf16>, vector<8x8xf32> -> vector<8x8xf32>
    %43 = vector.broadcast %20 : vector<1x8xf32> to vector<8x8xf32>
    %44 = arith.addf %42, %43 : vector<8x8xf32>
    %cst_21 = arith.constant dense<0xFF800000> : vector<8xf32>
    %45 = vector.multi_reduction <maximumf>, %44, %cst_21 [1] : vector<8x8xf32> to vector<8xf32>
    %46 = vector.shape_cast %45 : vector<8xf32> to vector<8x1xf32>
    %47 = vector.broadcast %46 : vector<8x1xf32> to vector<8x8xf32>
    %48 = arith.subf %44, %47 : vector<8x8xf32>
    %49 = math.exp %48 : vector<8x8xf32>
    %cst_22 = arith.constant dense<0.000000e+00> : vector<8xf32>
    %50 = vector.multi_reduction <add>, %49, %cst_22 [1] : vector<8x8xf32> to vector<8xf32>
    %51 = vector.shape_cast %50 : vector<8xf32> to vector<8x1xf32>
    %52 = tpu.reciprocal %51 {approx = true} : vector<8x1xf32> -> vector<8x1xf32>
    %53 = vector.broadcast %52 : vector<8x1xf32> to vector<8x8xf32>
    %54 = arith.mulf %49, %53 : vector<8x8xf32>
    %55 = arith.truncf %54 : vector<8x8xf32> to vector<8x8xbf16>
    %cst_23 = arith.constant dense<0.000000e+00> : vector<8x8xf32>
    %56 = tpu.matmul %55, %41, %cst_23 {dimension_numbers = #tpu.dot_dimension_numbers<[1], [0], [0], [1], [0, 0, 1, 1], [], []>} : vector<8x8xbf16>, vector<8x8xbf16>, vector<8x8xf32> -> vector<8x8xf32>
    %57 = vector.extract_strided_slice %12 {offsets = [0, 16], sizes = [8, 8], strides = [1, 1]} : vector<8x32xbf16> to vector<8x8xbf16>
    %58 = vector.extract_strided_slice %15 {offsets = [0, 16], sizes = [8, 8], strides = [1, 1]} : vector<8x32xbf16> to vector<8x8xbf16>
    %59 = vector.extract_strided_slice %18 {offsets = [0, 16], sizes = [8, 8], strides = [1, 1]} : vector<8x32xbf16> to vector<8x8xbf16>
    %cst_24 = arith.constant dense<0.000000e+00> : vector<8x8xf32>
    %60 = tpu.matmul %57, %58, %cst_24 {dimension_numbers = #tpu.dot_dimension_numbers<[1], [1], [0], [0], [0, 0, 1, 0], [], []>} : vector<8x8xbf16>, vector<8x8xbf16>, vector<8x8xf32> -> vector<8x8xf32>
    %61 = vector.broadcast %20 : vector<1x8xf32> to vector<8x8xf32>
    %62 = arith.addf %60, %61 : vector<8x8xf32>
    %cst_25 = arith.constant dense<0xFF800000> : vector<8xf32>
    %63 = vector.multi_reduction <maximumf>, %62, %cst_25 [1] : vector<8x8xf32> to vector<8xf32>
    %64 = vector.shape_cast %63 : vector<8xf32> to vector<8x1xf32>
    %65 = vector.broadcast %64 : vector<8x1xf32> to vector<8x8xf32>
    %66 = arith.subf %62, %65 : vector<8x8xf32>
    %67 = math.exp %66 : vector<8x8xf32>
    %cst_26 = arith.constant dense<0.000000e+00> : vector<8xf32>
    %68 = vector.multi_reduction <add>, %67, %cst_26 [1] : vector<8x8xf32> to vector<8xf32>
    %69 = vector.shape_cast %68 : vector<8xf32> to vector<8x1xf32>
    %70 = tpu.reciprocal %69 {approx = true} : vector<8x1xf32> -> vector<8x1xf32>
    %71 = vector.broadcast %70 : vector<8x1xf32> to vector<8x8xf32>
    %72 = arith.mulf %67, %71 : vector<8x8xf32>
    %73 = arith.truncf %72 : vector<8x8xf32> to vector<8x8xbf16>
    %cst_27 = arith.constant dense<0.000000e+00> : vector<8x8xf32>
    %74 = tpu.matmul %73, %59, %cst_27 {dimension_numbers = #tpu.dot_dimension_numbers<[1], [0], [0], [1], [0, 0, 1, 1], [], []>} : vector<8x8xbf16>, vector<8x8xbf16>, vector<8x8xf32> -> vector<8x8xf32>
    %75 = vector.extract_strided_slice %12 {offsets = [0, 24], sizes = [8, 8], strides = [1, 1]} : vector<8x32xbf16> to vector<8x8xbf16>
    %76 = vector.extract_strided_slice %15 {offsets = [0, 24], sizes = [8, 8], strides = [1, 1]} : vector<8x32xbf16> to vector<8x8xbf16>
    %77 = vector.extract_strided_slice %18 {offsets = [0, 24], sizes = [8, 8], strides = [1, 1]} : vector<8x32xbf16> to vector<8x8xbf16>
    %cst_28 = arith.constant dense<0.000000e+00> : vector<8x8xf32>
    %78 = tpu.matmul %75, %76, %cst_28 {dimension_numbers = #tpu.dot_dimension_numbers<[1], [1], [0], [0], [0, 0, 1, 0], [], []>} : vector<8x8xbf16>, vector<8x8xbf16>, vector<8x8xf32> -> vector<8x8xf32>
    %79 = vector.broadcast %20 : vector<1x8xf32> to vector<8x8xf32>
    %80 = arith.addf %78, %79 : vector<8x8xf32>
    %cst_29 = arith.constant dense<0xFF800000> : vector<8xf32>
    %81 = vector.multi_reduction <maximumf>, %80, %cst_29 [1] : vector<8x8xf32> to vector<8xf32>
    %82 = vector.shape_cast %81 : vector<8xf32> to vector<8x1xf32>
    %83 = vector.broadcast %82 : vector<8x1xf32> to vector<8x8xf32>
    %84 = arith.subf %80, %83 : vector<8x8xf32>
    %85 = math.exp %84 : vector<8x8xf32>
    %cst_30 = arith.constant dense<0.000000e+00> : vector<8xf32>
    %86 = vector.multi_reduction <add>, %85, %cst_30 [1] : vector<8x8xf32> to vector<8xf32>
    %87 = vector.shape_cast %86 : vector<8xf32> to vector<8x1xf32>
    %88 = tpu.reciprocal %87 {approx = true} : vector<8x1xf32> -> vector<8x1xf32>
    %89 = vector.broadcast %88 : vector<8x1xf32> to vector<8x8xf32>
    %90 = arith.mulf %85, %89 : vector<8x8xf32>
    %91 = arith.truncf %90 : vector<8x8xf32> to vector<8x8xbf16>
    %cst_31 = arith.constant dense<0.000000e+00> : vector<8x8xf32>
    %92 = tpu.matmul %91, %77, %cst_31 {dimension_numbers = #tpu.dot_dimension_numbers<[1], [0], [0], [1], [0, 0, 1, 1], [], []>} : vector<8x8xbf16>, vector<8x8xbf16>, vector<8x8xf32> -> vector<8x8xf32>
    %93 = tpu.concatenate %38, %56, %74, %92 in 1 : vector<8x8xf32>, vector<8x8xf32>, vector<8x8xf32>, vector<8x8xf32> -> vector<8x32xf32>
    %94 = arith.truncf %93 : vector<8x32xf32> to vector<8x32xbf16>
    %c0_i32_32 = arith.constant 0 : i32
    %95 = arith.cmpi eq, %arg2, %c0_i32_32 : i32
    %96 = arith.extui %95 : i1 to i32
    %c0_i32_33 = arith.constant 0 : i32
    %97 = arith.cmpi ne, %96, %c0_i32_33 : i32
    scf.if %97 {
      %cst_44 = arith.constant 0.000000e+00 : f32
      %107 = vector.broadcast %cst_44 : f32 to vector<8x32xf32>
      %c0_45 = arith.constant 0 : index
      %c0_46 = arith.constant 0 : index
      %108 = vector.load %arg17[%c0_45, %c0_46] : memref<8x32xf32, #tpu.memory_space<vmem>>, vector<8x32xf32>
      tpu.vector_store %arg17[%c0_45, %c0_46], %107 {strides = array<i32>} : memref<8x32xf32, #tpu.memory_space<vmem>>, vector<8x32xf32>,
    } else {
    }
    %c0_34 = arith.constant 0 : index
    %c0_35 = arith.constant 0 : index
    %98 = vector.load %arg17[%c0_34, %c0_35] : memref<8x32xf32, #tpu.memory_space<vmem>>, vector<8x32xf32>
    %c0_36 = arith.constant 0 : index
    %c0_37 = arith.constant 0 : index
    %c0_38 = arith.constant 0 : index
    %99 = vector.load %arg10[%c0_36, %c0_37, %c0_38] : memref<1x32x32xbf16, #tpu.memory_space<vmem>>, vector<1x32x32xbf16>
    %100 = vector.shape_cast %99 : vector<1x32x32xbf16> to vector<32x32xbf16>
    %cst_39 = arith.constant dense<0.000000e+00> : vector<8x32xf32>
    %101 = tpu.matmul %94, %100, %cst_39 {dimension_numbers = #tpu.dot_dimension_numbers<[1], [0], [0], [1], [0, 0, 1, 1], [], []>} : vector<8x32xbf16>, vector<32x32xbf16>, vector<8x32xf32> -> vector<8x32xf32>
    %102 = arith.addf %98, %101 : vector<8x32xf32>
    %c0_40 = arith.constant 0 : index
    %c0_41 = arith.constant 0 : index
    %103 = vector.load %arg17[%c0_40, %c0_41] : memref<8x32xf32, #tpu.memory_space<vmem>>, vector<8x32xf32>
    tpu.vector_store %arg17[%c0_40, %c0_41], %102 {strides = array<i32>} : memref<8x32xf32, #tpu.memory_space<vmem>>, vector<8x32xf32>,
    %c0_i32_42 = arith.constant 0 : i32
    %104 = arith.cmpi eq, %arg2, %c0_i32_42 : i32
    %105 = arith.extui %104 : i1 to i32
    %c0_i32_43 = arith.constant 0 : i32
    %106 = arith.cmpi ne, %105, %c0_i32_43 : i32
    scf.if %106 {
      %c0_44 = arith.constant 0 : index
      %c0_45 = arith.constant 0 : index
      %107 = vector.load %arg17[%c0_44, %c0_45] : memref<8x32xf32, #tpu.memory_space<vmem>>, vector<8x32xf32>
      %c0_46 = arith.constant 0 : index
      %c0_47 = arith.constant 0 : index
      %108 = vector.load %arg11[%c0_46, %c0_47] : memref<1x32xf32, #tpu.memory_space<vmem>>, vector<1x32xf32>
      %109 = vector.broadcast %108 : vector<1x32xf32> to vector<8x32xf32>
      %110 = arith.addf %107, %109 : vector<8x32xf32>
      %111 = arith.extf %1 : vector<8x32xbf16> to vector<8x32xf32>
      %112 = arith.addf %110, %111 : vector<8x32xf32>
      %cst_48 = arith.constant dense<0.000000e+00> : vector<8xf32>
      %113 = vector.multi_reduction <add>, %112, %cst_48 [1] : vector<8x32xf32> to vector<8xf32>
      %114 = vector.shape_cast %113 : vector<8xf32> to vector<8x1xf32>
      %cst_49 = arith.constant 3.200000e+01 : f32
      %115 = vector.broadcast %cst_49 : f32 to vector<8x1xf32>
      %116 = arith.divf %114, %115 : vector<8x1xf32>
      %117 = vector.broadcast %116 : vector<8x1xf32> to vector<8x32xf32>
      %118 = arith.subf %112, %117 : vector<8x32xf32>
      %119 = arith.mulf %118, %118 : vector<8x32xf32>
      %cst_50 = arith.constant dense<0.000000e+00> : vector<8xf32>
      %120 = vector.multi_reduction <add>, %119, %cst_50 [1] : vector<8x32xf32> to vector<8xf32>
      %121 = vector.shape_cast %120 : vector<8xf32> to vector<8x1xf32>
      %cst_51 = arith.constant 3.200000e+01 : f32
      %122 = vector.broadcast %cst_51 : f32 to vector<8x1xf32>
      %123 = arith.divf %121, %122 : vector<8x1xf32>
      %124 = vector.broadcast %116 : vector<8x1xf32> to vector<8x32xf32>
      %125 = arith.subf %112, %124 : vector<8x32xf32>
      %cst_52 = arith.constant 9.99999996E-13 : f32
      %126 = vector.broadcast %cst_52 : f32 to vector<8x1xf32>
      %127 = arith.addf %123, %126 : vector<8x1xf32>
      %128 = math.rsqrt %127 : vector<8x1xf32>
      %129 = vector.broadcast %128 : vector<8x1xf32> to vector<8x32xf32>
      %130 = arith.mulf %125, %129 : vector<8x32xf32>
      %c0_53 = arith.constant 0 : index
      %c0_54 = arith.constant 0 : index
      %131 = vector.load %arg12[%c0_53, %c0_54] : memref<1x32xf32, #tpu.memory_space<vmem>>, vector<1x32xf32>
      %132 = vector.broadcast %131 : vector<1x32xf32> to vector<8x32xf32>
      %133 = arith.mulf %130, %132 : vector<8x32xf32>
      %c0_55 = arith.constant 0 : index
      %c0_56 = arith.constant 0 : index
      %134 = vector.load %arg13[%c0_55, %c0_56] : memref<1x32xf32, #tpu.memory_space<vmem>>, vector<1x32xf32>
      %135 = vector.broadcast %134 : vector<1x32xf32> to vector<8x32xf32>
      %136 = arith.addf %133, %135 : vector<8x32xf32>
      %c0_57 = arith.constant 0 : index
      %c0_58 = arith.constant 0 : index
      %c0_59 = arith.constant 0 : index
      %137 = vector.load %arg14[%c0_57, %c0_58, %c0_59] : memref<1x8x32xf32, #tpu.memory_space<vmem>>, vector<1x8x32xf32>
      %138 = vector.shape_cast %137 : vector<1x8x32xf32> to vector<8x32xf32>
      %139 = vector.shape_cast %136 : vector<8x32xf32> to vector<1x8x32xf32>
      tpu.vector_store %arg14[%c0_57, %c0_58, %c0_59], %139 {strides = array<i32>} : memref<1x8x32xf32, #tpu.memory_space<vmem>>, vector<1x8x32xf32>,
    } else {
    }
    return
  }
  func.func @transform_0(%arg0: i32, %arg1: i32, %arg2: i32) -> (i32, i32, i32) {
    %c0_i32 = arith.constant 0 : i32
    %c0_i32_0 = arith.constant 0 : i32
    return %arg0, %arg1, %c0_i32 : i32, i32, i32
  }
  func.func @transform_1(%arg0: i32, %arg1: i32, %arg2: i32) -> (i32, i32, i32) {
    %c0_i32 = arith.constant 0 : i32
    %c0_i32_0 = arith.constant 0 : i32
    %c0_i32_1 = arith.constant 0 : i32
    return %arg0, %c0_i32, %c0_i32_0 : i32, i32, i32
  }
  func.func @transform_2(%arg0: i32, %arg1: i32, %arg2: i32) -> (i32, i32, i32) {
    %c0_i32 = arith.constant 0 : i32
    %c0_i32_0 = arith.constant 0 : i32
    %c0_i32_1 = arith.constant 0 : i32
    return %arg0, %c0_i32, %c0_i32_0 : i32, i32, i32
  }
  func.func @transform_3(%arg0: i32, %arg1: i32, %arg2: i32) -> (i32, i32, i32) {
    %c0_i32 = arith.constant 0 : i32
    %c0_i32_0 = arith.constant 0 : i32
    %c0_i32_1 = arith.constant 0 : i32
    return %arg2, %c0_i32, %c0_i32_0 : i32, i32, i32
  }
  func.func @transform_4(%arg0: i32, %arg1: i32, %arg2: i32) -> (i32, i32, i32) {
    %c0_i32 = arith.constant 0 : i32
    %c0_i32_0 = arith.constant 0 : i32
    %c0_i32_1 = arith.constant 0 : i32
    return %arg2, %c0_i32, %c0_i32_0 : i32, i32, i32
  }
  func.func @transform_5(%arg0: i32, %arg1: i32, %arg2: i32) -> (i32, i32, i32) {
    %c0_i32 = arith.constant 0 : i32
    %c0_i32_0 = arith.constant 0 : i32
    %c0_i32_1 = arith.constant 0 : i32
    return %arg2, %c0_i32, %c0_i32_0 : i32, i32, i32
  }
  func.func @transform_6(%arg0: i32, %arg1: i32, %arg2: i32) -> (i32, i32, i32) {
    %c0_i32 = arith.constant 0 : i32
    %c0_i32_0 = arith.constant 0 : i32
    %c0_i32_1 = arith.constant 0 : i32
    return %arg2, %c0_i32, %c0_i32_0 : i32, i32, i32
  }
  func.func @transform_7(%arg0: i32, %arg1: i32, %arg2: i32) -> (i32, i32, i32) {
    %c0_i32 = arith.constant 0 : i32
    %c0_i32_0 = arith.constant 0 : i32
    %c0_i32_1 = arith.constant 0 : i32
    return %arg2, %c0_i32, %c0_i32_0 : i32, i32, i32
  }
  func.func @transform_8(%arg0: i32, %arg1: i32, %arg2: i32) -> (i32, i32) {
    %c0_i32 = arith.constant 0 : i32
    %c0_i32_0 = arith.constant 0 : i32
    %c0_i32_1 = arith.constant 0 : i32
    return %c0_i32, %c0_i32_0 : i32, i32
  }
  func.func @transform_9(%arg0: i32, %arg1: i32, %arg2: i32) -> (i32, i32) {
    %c0_i32 = arith.constant 0 : i32
    %c0_i32_0 = arith.constant 0 : i32
    %c0_i32_1 = arith.constant 0 : i32
    return %c0_i32, %c0_i32_0 : i32, i32
  }
  func.func @transform_10(%arg0: i32, %arg1: i32, %arg2: i32) -> (i32, i32) {
    %c0_i32 = arith.constant 0 : i32
    %c0_i32_0 = arith.constant 0 : i32
    %c0_i32_1 = arith.constant 0 : i32
    return %c0_i32, %c0_i32_0 : i32, i32
  }
  func.func @transform_11(%arg0: i32, %arg1: i32, %arg2: i32) -> (i32, i32, i32) {
    %c0_i32 = arith.constant 0 : i32
    %c0_i32_0 = arith.constant 0 : i32
    return %arg0, %arg1, %c0_i32 : i32, i32, i32
  }
}

</mosaic_0001>

<bundles_post_ra>
// kernel: tpu_custom_call.1
= control target key start
LH: loop header
LB: loop body
LE: loop exit
PB: predicated region body
PF: predicated region fallthrough
CT: control target
= control target key end

     0   :  { %s2546_s0 = inlined_call_operand.hbm [shape: bf16[2,8,32], index: 0, kind: input, shape index: {}]   ;;  %s2547_s1 = inlined_call_operand.hbm [shape: bf16[2,8,32], index: 1, kind: input, shape index: {}]   ;;  %s2548_s2 = inlined_call_operand.vmem [shape: f32[2,1,8], index: 2, kind: input, shape index: {}]   ;;  %s2549_s3 = inlined_call_operand.hbm [shape: bf16[1,32,32], index: 3, kind: input, shape index: {}]   ;;  %s2550_s4 = inlined_call_operand.hbm [shape: f32[1,1,32], index: 4, kind: input, shape index: {}]   ;;  %s2551_s5 = inlined_call_operand.vmem [shape: bf16[1,32,64], index: 5, kind: input, shape index: {}]   ;;  %s2552_s6 = inlined_call_operand.vmem [shape: f32[1,1,64], index: 6, kind: input, shape index: {}]   ;;  %s2553_s7 = inlined_call_operand.hbm [shape: bf16[1,32,32], index: 7, kind: input, shape index: {}]   ;;  %s2554_s8 = inlined_call_operand.vmem [shape: f32[1,32], index: 8, kind: input, shape index: {}]   ;;  %s2555_s9 = inlined_call_operand.vmem [shape: f32[1,32], index: 9, kind: input, shape index: {}]   ;;  %s2556_s10 = inlined_call_operand.vmem [shape: f32[1,32], index: 10, kind: input, shape index: {}]   ;;  %s2557_s11 = inlined_call_operand.hbm [shape: f32[2,8,32], index: 11, kind: output, shape index: {}]  }
   0x1   :  { %2565 = sst [smem:[#allocation22_spill]] %s2548_s2 }
   0x2   :  { %2566 = sst [smem:[#allocation23_spill]] %s2549_s3 }
   0x3   :  { %2567 = sst [smem:[#allocation24_spill]] %s2550_s4 }
   0x4   :  { %2568 = sst [smem:[#allocation25_spill]] %s2553_s7 }
   0x5   :  { %2569 = sst [smem:[#allocation26_spill]] %s2554_s8 }
   0x6   :  { %2570 = sst [smem:[#allocation27_spill]] %s2555_s9 }
   0x7   :  { %2571 = sst [smem:[#allocation28_spill]] %s2556_s10 }
   0x8   :  { %2572 = sst [smem:[#allocation29_spill]] %s2557_s11 }
   0x9   :  { %16 = vsyncpa [#allocation6], 0 }
   0xa   :  { %18 = vsyncpa [#allocation6 + $0x1], 0 }
   0xb   :  { %19 = vsyncpa [#allocation9], 0 }
   0xc   :  { %21 = vsyncpa [#allocation9 + $0x1], 0 }
   0xd   :  { %22 = vsyncpa [#allocation12], 0 }
   0xe   :  { %23 = vsyncpa [#allocation7], 0 }
   0xf   :  { %25 = vsyncpa [#allocation7 + $0x1], 0  ;;  %s2116_s17 = smov 0   ;;  %s2118_s18 = smov 0  }
  0x10   :  { %s2120_s19 = smov 0   ;;  %s2122_s20 = smov 0  }
  0x11   :  { %s2124_s21 = smov 0   ;;  %s2126_s22 = smov 0  }
  0x12 LB: > { %2573 = sst [smem:[#allocation20_spill]] %s2017_s17  ;;  %s2147_s23 = sadd.s32 4294967295, %s2037_s22   ;;  %s2037_s22 = sphi %s2126_s22, %s31_s22   ;;  %s2033_s21 = sphi %s2124_s21, %s2606_s21   ;;  %s2029_s20 = sphi %s2122_s20, %s2605_s20   ;;  %s2025_s19 = sphi %s2120_s19, %s2604_s19   ;;  %s2021_s18 = sphi %s2118_s18, %s2603_s18   ;;  %s2017_s17 = sphi %s2116_s17, %s2602_s17  }
  0x13   : > { %s1517_s24 = sadd.s32 4294967294, %s2037_s22   ;;  %p72_p0 = scmp.ne.s32.totalorder %s2021_s18, %s2017_s17 }
  0x14   : > { %p2561_p1 = scmp.eq.s32.totalorder %s2147_s23, 0  ;;  %p349_p3 = scmp.eq.s32.totalorder %s1517_s24, 1 }
  0x15   : > { %p1518_p5 = scmp.ge.s32.totalorder %s2037_s22, 1  ;;  %p356_p7 = scmp.lt.s32.totalorder %s2037_s22, 3 }
  0x16   : > { %p2156_p4 = por %p2561_p1, %p72_p0  ;;  %p2161_p6 = por %p349_p3, %p72_p0 }
  0x17   : > { %p2166_p8 = pnand %p1518_p5, %p356_p7  ;;  %s2039_s28 = smov [#allocation10]  }
  0x18   : > { %s2574_s25 = scalar_select %p2156_p4, 1, 0 }
  0x19   : > { %s2575_s26 = scalar_select %p2161_p6, 1, 0 }
  0x1a   : > { %s2577_s27 = scalar_select %p2166_p8, 1, 0 }
  0x1b   : > { %2576 = sst [smem:[#allocation21_spill]] %s2575_s26  ;;  %s371_s29 = sshll.u32 %s2039_s28, 4  ;;  %s2170_s29 = int_to_ptr.vmem [resolvable:$true] %s371_s29 }
  0x1c   : > { %p1682_p9 = pneg %p2166_p8  ;;  %s2040_s12 = smov [#allocation11]  }
  0x1d   : > { %s387_s13 = sshll.u32 %s2040_s12, 4  ;;  %s2041_s14 = smov [#allocation13]   ;;  %s2181_s13 = int_to_ptr.vmem [resolvable:$true] %s387_s13 }
  0x1e   : > { %p2177_p11 = pnand %p1682_p9, %p2561_p1  ;;  %s2183_s15 = sshll.u32 %s2041_s14, 4  ;;  %s415_s15 = int_to_ptr.vmem [resolvable:$true] %s2183_s15 }
  0x1f   : > { %s2579_s3 = sld [smem:[#allocation23_spill]] }
  0x20   : > { %p2193_p13 = pneg %p2177_p11 }
  0x25   : > { %s1799_s28 = scalar_lea.hbm %s2579_s3, 256 }
  0x26   : > { %p1800_p12 = scmp.ne.s32.totalorder %s2579_s3, %s1799_s28  ;;  %p1806_p5 = scmp.lt.u32.totalorder %s1799_s28, %s2579_s3 }
  0x28   : > { %p1802_p0 = pnand %p2193_p13, %p1800_p12 }
  0x2a   : > { %p1803_p3 = pneg %p1802_p0 }
  0x2c   : > { %p1808_p7 = pnand %p1806_p5, %p1803_p3 }
  0x2e   : > { %1811 = shalt.err (!%p1808_p7)
}
  0x2f   : > { %s1812_s17 = scalar_lea.vmem %s2170_s29, 256  ;;  %p1820_p2 = scmp.lt.s32.totalorder %s2170_s29, %s2170_s29 }
  0x30   : > { %p1813_p9 = scmp.ne.s32.totalorder %s2170_s29, %s1812_s17  ;;  %p1821_p6 = scmp.lt.s32.totalorder %s1812_s17, %s1812_s17 }
  0x32   : > { %p1815_p10 = pnand %p1813_p9, %p2193_p13  ;;  %p1822_p12 = por %p1821_p6, %p1820_p2 }
  0x34   : > { %p1816_p1 = pneg %p1815_p10 }
  0x36   : > { %p1823_p0 = pnand %p1822_p12, %p1816_p1 }
  0x38   : > { %1826 = shalt.err (!%p1823_p0)
}
  0x39   : > { %s2042_s26 = smov 64   ;;  %s2043_s16 = smov 4  }
  0x3a   : > { %1685 = dma.hbm_to_vmem [thread:$0]  (!%p2177_p11), %s2579_s3, 256, %s2170_s29, [#allocation9], %s2042_s26, %s2042_s26, %s2043_s16  }
  0x3b   : > { %s2581_s4 = sld [smem:[#allocation24_spill]] }
  0x41   : > { %s1827_s17 = scalar_lea.hbm %s2581_s4, 16 }
  0x42   : > { %p1828_p1 = scmp.ne.s32.totalorder %s2581_s4, %s1827_s17  ;;  %p1834_p10 = scmp.lt.u32.totalorder %s1827_s17, %s2581_s4 }
  0x44   : > { %p1830_p2 = pnand %p1828_p1, %p2193_p13 }
  0x46   : > { %p1831_p6 = pneg %p1830_p2 }
  0x48   : > { %p1836_p3 = pnand %p1834_p10, %p1831_p6 }
  0x4a   : > { %1839 = shalt.err (!%p1836_p3)
}
  0x4b   : > { %s1840_s29 = scalar_lea.vmem %s2181_s13, 16  ;;  %s1847_s9 = scalar_lea.vmem %s2181_s13, 32 }
  0x4c   : > { %p1841_p5 = scmp.ne.s32.totalorder %s2181_s13, %s1840_s29  ;;  %p1848_p12 = scmp.lt.s32.totalorder %s2181_s13, %s2181_s13 }
  0x4d   : > { %p1849_p0 = scmp.lt.s32.totalorder %s1847_s9, %s1840_s29 }
  0x4e   : > { %p1843_p7 = pnand %p1841_p5, %p2193_p13 }
  0x4f   : > { %p1850_p1 = por %p1849_p0, %p1848_p12 }
  0x50   : > { %p1844_p9 = pneg %p1843_p7 }
  0x52   : > { %p1851_p2 = pnand %p1850_p1, %p1844_p9 }
  0x54   : > { %1854 = shalt.err (!%p1851_p2)
}
  0x55   : > { %1688 = dma.hbm_to_vmem [thread:$0]  (!%p2177_p11), %s2581_s4, 16, %s2181_s13, [#allocation12]  }
  0x56   : > { %s2582_s7 = sld [smem:[#allocation25_spill]] }
  0x5c   : > { %s1855_s28 = scalar_lea.hbm %s2582_s7, 256 }
  0x5d   : > { %p1856_p6 = scmp.ne.s32.totalorder %s2582_s7, %s1855_s28  ;;  %p1862_p5 = scmp.lt.u32.totalorder %s1855_s28, %s2582_s7 }
  0x5f   : > { %p1858_p10 = pnand %p1856_p6, %p2193_p13 }
  0x61   : > { %p1859_p3 = pneg %p1858_p10 }
  0x63   : > { %p1864_p7 = pnand %p1862_p5, %p1859_p3 }
  0x65   : > { %1867 = shalt.err (!%p1864_p7)
}
  0x66   : > { %s1868_s9 = scalar_lea.vmem %s415_s15, 256  ;;  %p1876_p1 = scmp.lt.s32.totalorder %s415_s15, %s415_s15 }
  0x67   : > { %p1869_p9 = scmp.ne.s32.totalorder %s415_s15, %s1868_s9  ;;  %p1877_p2 = scmp.lt.s32.totalorder %s1868_s9, %s1868_s9 }
  0x69   : > { %p1871_p12 = pnand %p1869_p9, %p2193_p13  ;;  %p1878_p4 = por %p1877_p2, %p1876_p1 }
  0x6b   : > { %p1872_p0 = pneg %p1871_p12 }
  0x6d   : > { %p1879_p8 = pnand %p1878_p4, %p1872_p0 }
  0x6f   : > { %1882 = shalt.err (!%p1879_p8)
}
  0x70   : > { %1691 = dma.hbm_to_vmem [thread:$0]  (!%p2177_p11), %s2582_s7, 256, %s415_s15, [#allocation12], %s2042_s26, %s2042_s26, %s2043_s16  }
  0x71   : > { %s59_s11 = sadd.s32 1, %s2025_s19  ;;  %s50_s30 = sadd.s32 1, %s2033_s21 }
  0x72   : > { %p66_p4 = scmp.ne.s32.totalorder %s2025_s19, %s2021_s18  ;;  %p52_p8 = scmp.ge.s32.totalorder %s50_s30, 2 }
  0x73   : > { %p67_p13 = scmp.eq.s32.totalorder %s2037_s22, 0  ;;  %p2583_p6 = scmp.eq.s32.totalorder %s2147_s23, 1 }
  0x74   : > { %p1706_p3 = scmp.lt.s32.totalorder %s2037_s22, 2  ;;  %s2608_s30 = smov (%p52_p8, %s50_s30), 0 }
  0x75   : > { %p2270_p10 = por %p2583_p6, %p66_p4  ;;  %p68_p5 = por %p67_p13, %p66_p4 }
  0x76   : > { %s437_s10 = sand.u32 1, %s2025_s19   ;;  %s54_s24 = ssub.s32 %s2033_s21, %s2608_s30 }
  0x77   : > { %s2584_s8 = scalar_select %p2270_p10, 1, 0 }
  0x78   : > { %p57_p11 = scmp.eq.s32.totalorder %s54_s24, 0  ;;  %s2280_s15 = sshll.u32 %s437_s10, 2 }
  0x79   : > { %s1526_s26 = sshll.u32 %s2033_s21, 6  ;;  %s441_s17 = scalar_lea.vmem [#allocation5], %s2280_s15 }
  0x7a   : > { %s2284_s16 = scalar_select %p57_p11, %s2025_s19, %s59_s11  }
  0x7b   : > { %s2289_s14 = scalar_lea.hbm %s2546_s0, %s1526_s26  ;;  %s449_s29 = sshll.u32 %s441_s17, 4  ;;  %s2292_s29 = int_to_ptr.vmem [resolvable:$true] %s449_s29 }
  0x7c   : > { %p2296_p7 = pnand %p1706_p3, %p68_p5  ;;  %s2303_s11 = scalar_lea.hbm %s2547_s1, %s1526_s26 }
  0x7d   : > { %s456_s24 = sand.u32 1, %s2037_s22   ;;  %s438_s28 = scalar_lea.sflag [#allocation6], %s437_s10 }
  0x7e   : > { %s1883_s12 = scalar_lea.hbm %s2289_s14, 64  ;;  %p1885_p12 = pneg %p2296_p7 }
  0x7f   : > { %p1884_p9 = scmp.ne.s32.totalorder %s2289_s14, %s1883_s12  ;;  %s1888_s4 = scalar_lea.hbm %s2546_s0, 128 }
  0x80   : > { %p1889_p2 = scmp.lt.u32.totalorder %s2289_s14, %s2546_s0  ;;  %p1890_p4 = scmp.lt.u32.totalorder %s1888_s4, %s1883_s12 }
  0x81   : > { %p1886_p0 = pnand %p1885_p12, %p1884_p9  ;;  %p1892_p13 = scmp.lt.u32.totalorder %s1883_s12, %s2289_s14 }
  0x82   : > { %p1891_p8 = por %p1890_p4, %p1889_p2 }
  0x83   : > { %p1887_p1 = pneg %p1886_p0 }
  0x84   : > { %p1893_p6 = por %p1892_p13, %p1891_p8 }
  0x86   : > { %p1894_p3 = pnand %p1893_p6, %p1887_p1 }
  0x88   : > { %1897 = shalt.err (!%p1894_p3)
}
  0x89   : > { %s1898_s10 = scalar_lea.vmem %s2292_s29, 64  ;;  %s2044_s3 = smov [#allocation5]  }
  0x8a   : > { %p1899_p5 = scmp.ne.s32.totalorder %s2292_s29, %s1898_s10  ;;  %s1903_s26 = sshll.u32 %s2044_s3, 4  ;;  %s1904_s26 = int_to_ptr.vmem [resolvable:$false] %s1903_s26 }
  0x8b   : > { %s1905_s7 = scalar_lea.vmem %s1904_s26, 128  ;;  %p1906_p0 = scmp.lt.s32.totalorder %s2292_s29, %s1904_s26 }
  0x8c   : > { %p1901_p11 = pnand %p1899_p5, %p1885_p12  ;;  %p1907_p2 = scmp.lt.s32.totalorder %s1905_s7, %s1898_s10 }
  0x8e   : > { %p1902_p9 = pneg %p1901_p11  ;;  %p1908_p4 = por %p1907_p2, %p1906_p0 }
  0x90   : > { %p1909_p8 = pnand %p1908_p4, %p1902_p9 }
  0x92   : > { %1912 = shalt.err (!%p1909_p8)
}
  0x93   : > { %1695 = dma.hbm_to_vmem [thread:$0]  (!%p2296_p7), %s2289_s14, 64, %s2292_s29, %s438_s28  }
  0x94   : > { %s460_s4 = scalar_lea.vmem [#allocation8], %s2280_s15  ;;  %s457_s12 = scalar_lea.sflag [#allocation9], %s456_s24 }
  0x95   : > { %s467_s2 = sshll.u32 %s460_s4, 4  ;;  %s1913_s17 = scalar_lea.hbm %s2303_s11, 64  ;;  %s468_s2 = int_to_ptr.vmem [resolvable:$true] %s467_s2 }
  0x96   : > { %p1914_p1 = scmp.ne.s32.totalorder %s2303_s11, %s1913_s17  ;;  %s1918_s3 = scalar_lea.hbm %s2547_s1, 128 }
  0x97   : > { %p1919_p3 = scmp.lt.u32.totalorder %s2303_s11, %s2547_s1  ;;  %p1920_p5 = scmp.lt.u32.totalorder %s1918_s3, %s1913_s17 }
  0x98   : > { %p1916_p13 = pnand %p1914_p1, %p1885_p12  ;;  %p1922_p9 = scmp.lt.u32.totalorder %s1913_s17, %s2303_s11 }
  0x99   : > { %p1921_p11 = por %p1920_p5, %p1919_p3 }
  0x9a   : > { %p1917_p6 = pneg %p1916_p13 }
  0x9b   : > { %p1923_p0 = por %p1922_p9, %p1921_p11 }
  0x9d   : > { %p1924_p2 = pnand %p1923_p0, %p1917_p6 }
  0x9f   : > { %1927 = shalt.err (!%p1924_p2)
}
  0xa0   : > { %s1928_s15 = scalar_lea.vmem %s468_s2, 64  ;;  %s2045_s14 = smov [#allocation8]  }
  0xa1   : > { %p1929_p4 = scmp.ne.s32.totalorder %s468_s2, %s1928_s15  ;;  %s1933_s29 = sshll.u32 %s2045_s14, 4  ;;  %s1934_s29 = int_to_ptr.vmem [resolvable:$false] %s1933_s29 }
  0xa2   : > { %s1935_s24 = scalar_lea.vmem %s1934_s29, 128  ;;  %p1936_p13 = scmp.lt.s32.totalorder %s468_s2, %s1934_s29 }
  0xa3   : > { %p1931_p8 = pnand %p1929_p4, %p1885_p12  ;;  %p1937_p10 = scmp.lt.s32.totalorder %s1935_s24, %s1928_s15 }
  0xa5   : > { %p1932_p1 = pneg %p1931_p8  ;;  %p1938_p3 = por %p1937_p10, %p1936_p13 }
  0xa7   : > { %p1939_p5 = pnand %p1938_p3, %p1932_p1 }
  0xa9   : > { %1942 = shalt.err (!%p1939_p5)
}
  0xaa   : > { %1698 = dma.hbm_to_vmem [thread:$0]  (!%p2296_p7), %s2303_s11, 64, %s468_s2, %s457_s12  }
  0xab   : > { %p2586_p6 = scmp.ne.s32.totalorder %s2577_s27, 0 }
  0xac   : > { %s2356_s28 = sand.u32 (!%p2586_p6), 1, %s2021_s18   ;;  %p2587_p10 = scmp.ne.s32.totalorder (!%p2586_p6), %s2574_s25, 0 }
  0xad   : > { %482 = sbr.rel (%p2586_p6) target bundleno = 1979 (0x7bb), region = 64  ;;  %s1530_s4 = sshll.u32 (!%p2586_p6), %s2356_s28, 2 }
  0xae   : > { %s485_s17 = scalar_lea.sflag (!%p2586_p6), [#allocation6], %s2356_s28  ;;  %s2360_s13 = scalar_lea.vmem (!%p2586_p6), [#allocation5], %s1530_s4 }
  0xb4   : > { %1996 = dma.done.wait (%p2587_p10), %s485_s17, 64  }
  0xb5   : > { %1998 = vsyncadd (%p2587_p10), %s485_s17, 4294967232  ;;  %s493_s9 = sand.u32 1, %s2147_s23   ;;  %s497_s11 = scalar_lea.vmem [#allocation8], %s1530_s4 }
  0xb6   : > { %s494_s27 = scalar_lea.sflag [#allocation9], %s493_s9 }
  0xb7   : > { %2000 = dma.done.wait (%p2587_p10), %s494_s27, 64  }
  0xb8   : > { %2002 = vsyncadd (%p2587_p10), %s494_s27, 4294967232  ;;  %p2588_p7 = scmp.eq.s32.totalorder %s2147_s23, 0 }
  0xba   : > { %2004 = dma.done.wait (%p2588_p7), [#allocation9], 256   ;;  %p2589_p12 = pmov %p2588_p7 }
  0xbb   : > { %p2590_p11 = pmov %p2588_p7 }
  0xbc   : > { %2006 = vsyncadd (%p2589_p12), [#allocation9], 4294967040 }
  0xbd   : > { %2008 = dma.done.wait (%p2590_p11), [#allocation12], 272   ;;  %p2591_p9 = pmov %p2588_p7 }
  0xbe   : > { %vm605_vm0 = vcmask 261120   ;;  %v2046_v0 = vmov 0.0   ;;  %vm2047_vm1 = vmmov 0   ;;  %v1773_v1 = vld [vmem:[%s2551_s5] sm:$0xff]   ;;  %v1774_v2 = vld [vmem:[%s2551_s5 + $0x8] sm:$0xff]   ;;  %v1775_v3 = vld [vmem:[#allocation10] sm:$0xff]  }
  0xbf   : > { %2010 = vsyncadd (%p2591_p9), [#allocation12], 4294967024  ;;  %1592 = vmatprep.subr.bf16.mxu0 %v2046_v0  ;;  %1596 = vmatprep.mubr.msk.bf16.mxu0 %vm2047_vm1, %v2046_v0  ;;  %1209 = vst.msk [vmem:[#allocation4] sm:$0xff] %vm605_vm0, %v2046_v0  ;;  %v1776_v4 = vld [vmem:[#allocation10 + $0x8] sm:$0xff]   ;;  %v581_v5 = vld [vmem:[%s497_s11] sm:$0xf] }
  0xc0   : > { %1600 = vmatprep.subr.bf16.mxu1 %v2046_v0  ;;  %1604 = vmatprep.mubr.msk.bf16.mxu1 %vm2047_vm1, %v2046_v0  ;;  %v2398_v6 = vld [vmem:[%s2360_s13] sm:$0xf]  ;;  %vm652_vm2 = vcmask 257024   ;;  %vm744_vm3 = vcmask 64512   ;;  %s2048_s26 = smov 112   ;;  %s2049_s7 = smov 120  }
  0xc1   : > { %1593 = vmatpush3.bf16.msra.mxu0 %v1773_v1  ;;  %1601 = vmatpush3.bf16.msra.mxu1 %v1775_v3  ;;  %v1536_v7 = vld [vmem:[%s2552_s6] ss:$0 sm:$0xff]  ;;  %s2050_s15 = smov 104   ;;  %p564_p0 = scmp.lt.s32.totalorder %s2029_s20, 1  ;;  %vm806_vm4 = vcmask 1043456   ;;  %vm1200_vm5 = vcmask 130048  }
  0xc2   : > { %1594 = vmatprep.subr.bf16.mxu0 %v2046_v0  ;;  %1602 = vmatprep.subr.bf16.mxu1 %v2046_v0  ;;  %v1541_v18 = vld [vmem:[#allocation11] ss:$0 sm:$0xff]  ;;  %s2592_s4 = sld [smem:[#allocation22_spill]]  ;;  %s2051_s13 = smov 96   ;;  %vm1202_vm6 = vcmask 195584  }
  0xc3   : > { %s565_s14 = scalar_select %p564_p0, %s2029_s20, 1 }
  0xc4   : > { %s2052_s9 = smov 8   ;;  %s2053_s27 = smov 16  }
  0xc5   : > { %1595 = vmatpush3.bf16.msra.mxu0 %v1774_v2  ;;  %1603 = vmatpush3.bf16.msra.mxu1 %v1776_v4  ;;  %s2054_s11 = smov 24   ;;  %s2593_s2 = sld [smem:[#allocation26_spill]] }
  0xc6   : > { %1608 = vmatprep.subr.bf16.mxu0 %v2046_v0  ;;  %1614 = vmatprep.subr.bf16.mxu1 %v2046_v0  ;;  %s1535_s12 = sshll.u32 %s2356_s28, 3  ;;  %s1563_s29 = sshll.u32 %s2029_s20, 7 }
  0xc7   : > { %s563_s24 = scalar_lea.vmem [#allocation14], %s1535_s12  ;;  %p2597_p4 = scmp.ne.s32.totalorder %s2584_s8, 0 }
  0xc8   : > { %1597 = vmatmul.mubr.msk.bf16.vlgmr.msra.gmra.mrb[0].mxu0 %vm605_vm0, %v581_v5  ;;  %1605 = vmatmul.mubr.msk.bf16.vlgmr.msra.gmra.mrb[0].mxu1 %vm605_vm0, %v2398_v6  ;;  %s566_s17 = scalar_lea.vmem %s2592_s4, %s565_s14  ;;  %s2595_s14 = sld [smem:[#allocation28_spill]] }
  0xc9   : > { %1610 = vmatprep.mubr.msk.bf16.mxu0 %vm2047_vm1, %v2046_v0  ;;  %1616 = vmatprep.mubr.msk.bf16.mxu1 %vm2047_vm1, %v2046_v0  ;;  %v1545_v33 = vld [vmem:[%s566_s17] ss:$0 sm:$0xff]  ;;  %s1332_s4 = sshll.u32 %s563_s24, 4  ;;  %s2055_s20 = smov [#allocation14]   ;;  %s2498_s4 = int_to_ptr.vmem [resolvable:$true] %s1332_s4 }
  0xca   : > { %s1943_s25 = scalar_lea.vmem %s2498_s4, 128  ;;  %s1947_s23 = sshll.u32 %s2055_s20, 4  ;;  %s1948_s23 = int_to_ptr.vmem [resolvable:$false] %s1947_s23 }
  0xcb   : > { %p1944_p2 = scmp.ne.s32.totalorder %s2498_s4, %s1943_s25  ;;  %p1950_p13 = scmp.lt.s32.totalorder %s2498_s4, %s1948_s23 }
  0xcd   : > { %p1945_p8 = pnand %p1944_p2, %p2597_p4 }
  0xcf   : > { %p1946_p1 = pneg %p1945_p8 }
 0x19b   : > { %v643_v8 = vpop.f32.mrb[0].mxu0  ;;  %v724_v14 = vpop.f32.mrb[0].mxu1 }
 0x19c   : > { %v644_v9 = vadd.f32 %v1536_v7, %v643_v8  ;;  %v1598_v10 = vpop.f32.mrb[1].mxu0  ;;  %v1606_v15 = vpop.f32.mrb[1].mxu1  ;;  %v725_v19 = vadd.f32 %v1541_v18, %v724_v14 }
 0x19d   : > { %v646_v11 = vpop.f32.mrb[2].mxu0  ;;  %v727_v16 = vpop.f32.mrb[2].mxu1 }
 0x19e   : > { %v2410_v12 = vpack.c.bf16 %v644_v9, %v644_v9  ;;  %v1599_v13 = vpop.f32.mrb[3].mxu0  ;;  %v1607_v17 = vpop.f32.mrb[3].mxu1  ;;  %v730_v23 = vpack.c.bf16 %v725_v19, %v725_v19 }
 0x1a0   : > { %653 = vst.msk [vmem:[#allocation2] sm:$0xf] %vm652_vm2, %v2410_v12 }
 0x1a7   : > { %v733_v20 = vld [vmem:[#allocation2] sm:$0xf] }
 0x1a8   : > { %v749_v21 = vsel %vm744_vm3, %v733_v20, 0  ;;  %v1548_v22 = vcombine.low %v733_v20, %v733_v20 }
 0x1a9   : > { %1609 = vmatpush3.bf16.xpose.msra.mxu0 %v749_v21 }
 0x1aa   : > { %969 = vrot.lane.b32.xlu1 %v1548_v22, %s2048_s26  ;;  %856 = vrot.lane.b32.xlu0 %v1548_v22, %s2049_s7 }
 0x1ab   : > { %1620 = vmatprep.subr.bf16.mxu0 %v2046_v0 }
 0x1ae   : > { %967 = vrot.lane.b32.xlu1 %v730_v23, %s2048_s26  ;;  %851 = vrot.lane.b32.xlu0 %v730_v23, %s2049_s7 }
 0x1b0   : > { %1611 = vmatmul.mubr.msk.bf16.vlgmr.msra.gmra.mrb[4].mxu0 %vm744_vm3, %v730_v23 }
 0x1b1   : > { %1622 = vmatprep.mubr.msk.bf16.mxu0 %vm2047_vm1, %v2046_v0 }
 0x1b2   : > { %1077 = vrot.lane.b32.xlu1 %v730_v23, %s2050_s15  ;;  %1079 = vrot.lane.b32.xlu0 %v1548_v22, %s2050_s15 }
 0x21c   : > { %v857_v24 = vpop.permute.xlu0 %856  ;;  %v970_v26 = vpop.permute.xlu1 %969 }
 0x21d   : > { %v862_v25 = vsel %vm744_vm3, %v857_v24, 0  ;;  %v975_v28 = vsel %vm744_vm3, %v970_v26, 0 }
 0x21e   : > { %1621 = vmatpush3.bf16.xpose.msra.mxu0 %v862_v25 }
 0x21f   : > { %1632 = vmatprep.subr.bf16.mxu0 %v2046_v0 }
 0x220   : > { %v852_v27 = vpop.permute.xlu0 %851  ;;  %v968_v30 = vpop.permute.xlu1 %967 }
 0x224   : > { %v1080_v29 = vpop.permute.xlu0 %1079  ;;  %v1078_v32 = vpop.permute.xlu1 %1077 }
 0x225   : > { %1623 = vmatmul.mubr.msk.bf16.vlgmr.msra.gmra.mrb[8].mxu0 %vm744_vm3, %v852_v27  ;;  %v1085_v31 = vsel %vm744_vm3, %v1080_v29, 0 }
 0x226   : > { %1633 = vmatpush3.bf16.xpose.msra.mxu0 %v975_v28  ;;  %1634 = vmatprep.mubr.msk.bf16.mxu0 %vm2047_vm1, %v2046_v0 }
 0x227   : > { %1644 = vmatprep.subr.bf16.mxu0 %v2046_v0 }
 0x22d   : > { %1635 = vmatmul.mubr.msk.bf16.vlgmr.msra.gmra.mrb[12].mxu0 %vm744_vm3, %v968_v30 }
 0x22e   : > { %1645 = vmatpush3.bf16.xpose.msra.mxu0 %v1085_v31  ;;  %1646 = vmatprep.mubr.msk.bf16.mxu0 %vm2047_vm1, %v2046_v0 }
 0x22f   : > { %1656 = vmatprep.subr.bf16.mxu0 %v2046_v0 }
 0x235   : > { %1647 = vmatmul.mubr.msk.bf16.vlgmr.msra.gmra.mrb[16].mxu0 %vm744_vm3, %v1078_v32 }
 0x236   : > { %1660 = vmatprep.mubr.msk.bf16.mxu0 %vm2047_vm1, %v2046_v0 }
 0x283   : > { %v785_v34 = vpop.f32.mrb[4].mxu0 }
 0x284   : > { %v786_v35 = vadd.f32 %v1545_v33, %v785_v34  ;;  %v1612_v36 = vpop.f32.mrb[5].mxu0 }
 0x285   : > { %v788_v37 = vpop.f32.mrb[6].mxu0 }
 0x286   : > { %v1613_v38 = vpop.f32.mrb[7].mxu0  ;;  %v791_v39 = vsel %vm744_vm3, %v786_v35, -inf }
 0x287   : > { %792 = vmax.xlane.f32.xlu0 %v791_v39 }
 0x2f8   : > { %v898_v40 = vpop.f32.mrb[8].mxu0 }
 0x2f9   : > { %v899_v41 = vadd.f32 %v1545_v33, %v898_v40  ;;  %v1624_v42 = vpop.f32.mrb[9].mxu0 }
 0x2fa   : > { %v901_v43 = vpop.f32.mrb[10].mxu0 }
 0x2fb   : > { %v1625_v44 = vpop.f32.mrb[11].mxu0  ;;  %v904_v45 = vsel %vm744_vm3, %v899_v41, -inf }
 0x2fc   : > { %905 = vmax.xlane.f32.xlu1 %v904_v45 }
 0x300   : > { %v1011_v46 = vpop.f32.mrb[12].mxu0 }
 0x301   : > { %v1012_v47 = vadd.f32 %v1545_v33, %v1011_v46  ;;  %v1636_v48 = vpop.f32.mrb[13].mxu0  ;;  %v1779_v46 = vld [vmem:[#allocation13] sm:$0xff]  }
 0x302   : > { %v1014_v49 = vpop.f32.mrb[14].mxu0  ;;  %1657 = vmatpush3.bf16.msra.mxu0 %v1779_v46 }
 0x303   : > { %v1637_v50 = vpop.f32.mrb[15].mxu0  ;;  %v1017_v51 = vsel %vm744_vm3, %v1012_v47, -inf  ;;  %1658 = vmatprep.subr.bf16.mxu0 %v2046_v0 }
 0x304   : > { %1018 = vmax.xlane.f32.xlu0 %v1017_v51  ;;  %v1780_v51 = vld [vmem:[#allocation13 + $0x8] sm:$0xff]  }
 0x306   : > { %1659 = vmatpush3.bf16.msra.mxu0 %v1780_v51 }
 0x308   : > { %v1121_v52 = vpop.f32.mrb[16].mxu0 }
 0x309   : > { %v1122_v53 = vadd.f32 %v1545_v33, %v1121_v52  ;;  %v1648_v54 = vpop.f32.mrb[17].mxu0 }
 0x30a   : > { %v1124_v55 = vpop.f32.mrb[18].mxu0 }
 0x30b   : > { %v1649_v56 = vpop.f32.mrb[19].mxu0  ;;  %v1127_v57 = vsel %vm744_vm3, %v1122_v53, -inf }
 0x30c   : > { %1128 = vmax.xlane.f32.xlu0 %v1127_v57 }
 0x30d   : > { %657 = vrot.lane.b32.xlu1 %v2410_v12, %s2051_s13 }
 0x314   : > { %v793_v58 = vpop.xlane.xlu0 %792 }
 0x315   : > { %v794_v59 = vsub.f32 %v786_v35, %v793_v58 }
 0x317   : > { %v795_v60 = vmul.f32 1.442695, %v794_v59 }
 0x319   : > { %1781 = vpow2.f32 %v795_v60 }
 0x323   : > { %v1782_v61 = vpop.eup %1781 }
 0x324   : > { %v797_v62 = vsel %vm744_vm3, %v1782_v61, 0.0 }
 0x325   : > { %798 = vadd.xlane.f32.xlu0 %v797_v62 }
 0x389   : > { %v906_v63 = vpop.xlane.xlu1 %905 }
 0x38a   : > { %v907_v1 = vsub.f32 %v899_v41, %v906_v63 }
 0x38c   : > { %v908_v2 = vmul.f32 1.442695, %v907_v1 }
 0x38d   : > { %v658_v3 = vpop.permute.xlu1 %657 }
 0x38e   : > { %1783 = vpow2.f32 %v908_v2  ;;  %662 = vst.msk [vmem:[#allocation3] sm:$0xf] %vm652_vm2, %v658_v3  ;;  %v1210_v3 = vld [vmem:[#allocation4] sm:$0xff] }
 0x391   : > { %v1019_v4 = vpop.xlane.xlu0 %1018 }
 0x392   : > { %v1020_v5 = vsub.f32 %v1012_v47, %v1019_v4 }
 0x394   : > { %v1021_v7 = vmul.f32 1.442695, %v1020_v5 }
 0x395   : > { %v736_v8 = vld [vmem:[#allocation3] sm:$0xf] }
 0x396   : > { %1785 = vpow2.f32 %v1021_v7  ;;  %v808_v9 = vsel %vm806_vm4, %v736_v8, 0  ;;  %v1550_v10 = vcombine.low %v736_v8, %v736_v8 }
 0x397   : > { %1615 = vmatpush3.bf16.msra.mxu1 %v808_v9 }
 0x398   : > { %v1784_v11 = vpop.eup %1783  ;;  %919 = vrot.lane.b32.xlu1 %v1550_v10, %s2049_s7  ;;  %1626 = vmatprep.subr.bf16.mxu1 %v2046_v0 }
 0x399   : > { %v1129_v12 = vpop.xlane.xlu0 %1128  ;;  %v910_v13 = vsel %vm744_vm3, %v1784_v11, 0.0 }
 0x39a   : > { %v1130_v14 = vsub.f32 %v1122_v53, %v1129_v12  ;;  %911 = vadd.xlane.f32.xlu0 %v910_v13 }
 0x39c   : > { %v1131_v15 = vmul.f32 1.442695, %v1130_v14  ;;  %1139 = vrot.lane.b32.xlu1 %v1550_v10, %s2050_s15 }
 0x39e   : > { %1787 = vpow2.f32 %v1131_v15 }
 0x3a0   : > { %v1786_v16 = vpop.eup %1785 }
 0x3a1   : > { %v1023_v17 = vsel %vm744_vm3, %v1786_v16, 0.0 }
 0x3a2   : > { %1024 = vadd.xlane.f32.xlu0 %v1023_v17 }
 0x3a8   : > { %v1788_v18 = vpop.eup %1787 }
 0x3a9   : > { %v1133_v19 = vsel %vm744_vm3, %v1788_v18, 0.0 }
 0x3aa   : > { %1134 = vadd.xlane.f32.xlu0 %v1133_v19 }
 0x3b2   : > { %v799_v20 = vpop.xlane.xlu0 %798 }
 0x3b3   : > { %1789 = vrcp.f32 %v799_v20 }
 0x3bd   : > { %v1790_v21 = vpop.eup %1789 }
 0x3be   : > { %v801_v22 = vmul.f32 %v1790_v21, %v1782_v61 }
 0x3c0   : > { %1029 = vrot.lane.b32.xlu0 %v1550_v10, %s2048_s26  ;;  %v802_v23 = vpack.c.bf16 %v801_v22, %v801_v22  ;;  %v1559_v10 = vld [vmem:[%s2593_s2] ss:$0 sm:$0xff]  ;;  %s2594_s26 = sld [smem:[#allocation27_spill]]  ;;  %s1949_s2 = scalar_lea.vmem %s1948_s23, 256 }
 0x3c1   : > { %p1951_p3 = scmp.lt.s32.totalorder %s1949_s2, %s1943_s25 }
 0x3c2   : > { %1617 = vmatmul.mubr.msk.bf16.vlgmr.msra.gmra.mrb[4].mxu1 %vm744_vm3, %v802_v23 }
 0x3c3   : > { %1628 = vmatprep.mubr.msk.bf16.mxu1 %vm2047_vm1, %v2046_v0  ;;  %p1952_p5 = por %p1951_p3, %p1950_p13 }
 0x3c5   : > { %p1953_p6 = pnand %p1952_p5, %p1946_p1 }
 0x40a   : > { %v920_v24 = vpop.permute.xlu1 %919 }
 0x40b   : > { %v925_v25 = vsel %vm806_vm4, %v920_v24, 0  ;;  %v1560_v24 = vld [vmem:[%s2594_s26] ss:$0 sm:$0xff] }
 0x40c   : > { %1627 = vmatpush3.bf16.msra.mxu1 %v925_v25 }
 0x40d   : > { %1638 = vmatprep.subr.bf16.mxu1 %v2046_v0 }
 0x40e   : > { %v1140_v36 = vpop.permute.xlu1 %1139 }
 0x40f   : > { %v1145_v38 = vsel %vm806_vm4, %v1140_v36, 0 }
 0x427   : > { %v912_v26 = vpop.xlane.xlu0 %911 }
 0x428   : > { %1791 = vrcp.f32 %v912_v26  ;;  %v1561_v26 = vld [vmem:[%s2595_s14] ss:$0 sm:$0xff] }
 0x42f   : > { %v1025_v27 = vpop.xlane.xlu0 %1024 }
 0x430   : > { %1793 = vrcp.f32 %v1025_v27 }
 0x432   : > { %v1792_v28 = vpop.eup %1791 }
 0x433   : > { %v914_v29 = vmul.f32 %v1792_v28, %v1784_v11  ;;  %v1284_v11 = vunpack.c.l.bf16 %v2398_v6 }
 0x435   : > { %v915_v30 = vpack.c.bf16 %v914_v29, %v914_v29 }
 0x437   : > { %1629 = vmatmul.mubr.msk.bf16.vlgmr.msra.gmra.mrb[8].mxu1 %vm744_vm3, %v915_v30  ;;  %v1135_v31 = vpop.xlane.xlu0 %1134 }
 0x438   : > { %1795 = vrcp.f32 %v1135_v31  ;;  %1640 = vmatprep.mubr.msk.bf16.mxu1 %vm2047_vm1, %v2046_v0 }
 0x43a   : > { %v1794_v32 = vpop.eup %1793 }
 0x43b   : > { %v1027_v33 = vmul.f32 %v1794_v32, %v1786_v16  ;;  %v1030_v34 = vpop.permute.xlu0 %1029 }
 0x43c   : > { %v1035_v35 = vsel %vm806_vm4, %v1030_v34, 0 }
 0x43d   : > { %1639 = vmatpush3.bf16.msra.mxu1 %v1035_v35  ;;  %v1028_v37 = vpack.c.bf16 %v1027_v33, %v1027_v33 }
 0x43e   : > { %1650 = vmatprep.subr.bf16.mxu1 %v2046_v0 }
 0x440   : > { %1641 = vmatmul.mubr.msk.bf16.vlgmr.msra.gmra.mrb[12].mxu1 %vm744_vm3, %v1028_v37 }
 0x441   : > { %1651 = vmatpush3.bf16.msra.mxu1 %v1145_v38  ;;  %1652 = vmatprep.mubr.msk.bf16.mxu1 %vm2047_vm1, %v2046_v0 }
 0x442   : > { %v1796_v39 = vpop.eup %1795 }
 0x443   : > { %v1137_v40 = vmul.f32 %v1796_v39, %v1788_v18 }
 0x445   : > { %v1138_v41 = vpack.c.bf16 %v1137_v40, %v1137_v40 }
 0x448   : > { %1653 = vmatmul.mubr.msk.bf16.vlgmr.msra.gmra.mrb[16].mxu1 %vm744_vm3, %v1138_v41 }
 0x495   : > { %v844_v42 = vpop.f32.mrb[4].mxu1 }
 0x496   : > { %v1618_v43 = vpop.f32.mrb[5].mxu1 }
 0x497   : > { %v847_v44 = vpop.f32.mrb[6].mxu1 }
 0x498   : > { %v1619_v45 = vpop.f32.mrb[7].mxu1 }
 0x50a   : > { %v961_v47 = vpop.f32.mrb[8].mxu1 }
 0x50b   : > { %1188 = vrot.lane.b32.xlu1 %v961_v47, %s2052_s9  ;;  %v1630_v48 = vpop.f32.mrb[9].mxu1  ;;  %s2596_s9 = sld [smem:[#allocation29_spill]] }
 0x50c   : > { %v964_v49 = vpop.f32.mrb[10].mxu1 }
 0x50d   : > { %v1631_v50 = vpop.f32.mrb[11].mxu1 }
 0x513   : > { %v1071_v52 = vpop.f32.mrb[12].mxu1 }
 0x514   : > { %1192 = vrot.lane.b32.xlu1 %v1071_v52, %s2053_s27  ;;  %v1642_v53 = vpop.f32.mrb[13].mxu1  ;;  %s2496_s27 = scalar_lea.hbm %s2596_s9, %s1563_s29 }
 0x515   : > { %v1074_v54 = vpop.f32.mrb[14].mxu1 }
 0x516   : > { %v1643_v55 = vpop.f32.mrb[15].mxu1 }
 0x51b   : > { %v1181_v56 = vpop.f32.mrb[16].mxu1 }
 0x51c   : > { %1196 = vrot.lane.b32.xlu1 %v1181_v56, %s2054_s11  ;;  %v1654_v57 = vpop.f32.mrb[17].mxu1  ;;  %s1318_s11 = scalar_lea.sflag [#allocation7], %s2356_s28 }
 0x51d   : > { %v1184_v58 = vpop.f32.mrb[18].mxu1 }
 0x51e   : > { %v1655_v59 = vpop.f32.mrb[19].mxu1 }
 0x57d   : > { %v1189_v0 = vpop.permute.xlu1 %1188 }
 0x57e   : > { %v1199_v61 = vsel %vm744_vm3, %v844_v42, %v1189_v0 }
 0x586   : > { %v1193_v60 = vpop.permute.xlu1 %1192 }
 0x587   : > { %v1201_v62 = vsel %vm1200_vm5, %v1199_v61, %v1193_v60 }
 0x58e   : > { %v1197_v63 = vpop.permute.xlu1 %1196 }
 0x58f   : > { %v1203_v1 = vsel %vm1202_vm6, %v1201_v62, %v1197_v63 }
 0x590   : > { %v1204_v2 = vpack.c.bf16 %v1203_v1, %v1203_v1 }
 0x592   : > { %1661 = vmatmul.mubr.msk.bf16.vlgmr.msra.gmra.mrb[20].mxu0 %vm605_vm0, %v1204_v2 }
 0x665   : > { %v1264_v4 = vpop.f32.mrb[20].mxu0 }
 0x666   : > { %v1270_v5 = vadd.f32 %v1264_v4, %v1210_v3  ;;  %v1662_v7 = vpop.f32.mrb[21].mxu0 }
 0x667   : > { %v1267_v8 = vpop.f32.mrb[22].mxu0 }
 0x668   : > { %1271 = vst.msk [vmem:[#allocation4] sm:$0xff] %vm605_vm0, %v1270_v5  ;;  %v1663_v9 = vpop.f32.mrb[23].mxu0 }
 0x66f   : > { %v1275_v12 = vld [vmem:[#allocation4] sm:$0xff] }
 0x670   : > { %v1283_v13 = vadd.f32 %v1559_v10, %v1275_v12 }
 0x672   : > { %v1285_v14 = vadd.f32 %v1284_v11, %v1283_v13 }
 0x674   : > { %v1286_v15 = vsel %vm605_vm0, %v1285_v14, 0.0 }
 0x675   : > { %1287 = vadd.xlane.f32.xlu1 %v1286_v15 }
 0x702   : > { %v1288_v16 = vpop.xlane.xlu1 %1287 }
 0x703   : > { %v1290_v17 = vmul.f32 0.03125, %v1288_v16 }
 0x705   : > { %v1291_v18 = vsub.f32 %v1285_v14, %v1290_v17 }
 0x707   : > { %v1292_v19 = vmul.f32 %v1291_v18, %v1291_v18 }
 0x709   : > { %v1293_v20 = vsel %vm605_vm0, %v1292_v19, 0.0 }
 0x70a   : > { %1294 = vadd.xlane.f32.xlu0 %v1293_v20 }
 0x797   : > { %v1295_v21 = vpop.xlane.xlu0 %1294 }
 0x798   : > { %v1296_v22 = vmul.f32 0.03125, %v1295_v21 }
 0x79a   : > { %v1297_v23 = vadd.f32 1e-12, %v1296_v22 }
 0x79c   : > { %1797 = vrsqrt.f32 %v1297_v23 }
 0x7a6   : > { %v1798_v6 = vpop.eup %1797 }
 0x7a7   : > { %v1299_v25 = vmul.f32 %v1798_v6, %v1291_v18 }
 0x7a9   : > { %v1307_v27 = vmul.f32 %v1560_v24, %v1299_v25 }
 0x7ab   : > { %v1315_v28 = vadd.f32 %v1561_v26, %v1307_v27 }
 0x7ad   : > { %1316 = vst.msk [vmem:[%s563_s24] sm:$0xff] %vm605_vm0, %v1315_v28 }
 0x7ae   : > { %1956 = shalt.err (!%p1953_p6)
}
 0x7af   : > { %s1957_s28 = scalar_lea.hbm %s2496_s27, 128  ;;  %s1961_s3 = scalar_lea.hbm %s2596_s9, 256 }
 0x7b0   : > { %p1958_p10 = scmp.ne.s32.totalorder %s2496_s27, %s1957_s28  ;;  %p1962_p11 = scmp.lt.u32.totalorder %s2496_s27, %s2596_s9 }
 0x7b1   : > { %p1963_p9 = scmp.lt.u32.totalorder %s1961_s3, %s1957_s28  ;;  %p1965_p2 = scmp.lt.u32.totalorder %s1957_s28, %s2496_s27 }
 0x7b2   : > { %p1959_p7 = pnand %p1958_p10, %p2597_p4 }
 0x7b3   : > { %p1964_p0 = por %p1963_p9, %p1962_p11 }
 0x7b4   : > { %p1960_p12 = pneg %p1959_p7 }
 0x7b5   : > { %p1966_p8 = por %p1965_p2, %p1964_p0 }
 0x7b7   : > { %p1967_p1 = pnand %p1966_p8, %p1960_p12 }
 0x7b9   : > { %1970 = shalt.err (!%p1967_p1)
}
 0x7ba   : > { %1680 = dma.vmem_to_hbm [thread:$0]  (%p2597_p4), %s2498_s4, 128, %s2496_s27, %s1318_s11  }
 0x7bb PF: > { %s2598_s15 = sld [smem:[#allocation20_spill]]  ;;  %s2599_s14 = sld [smem:[#allocation21_spill]] }
 0x7bc   : > { %p2601_p3 = scmp.ge.s32.totalorder %s2037_s22, 2 }
 0x7c1   : > { %s1344_s29 = sand.u32 1, %s2598_s15   ;;  %p2600_p13 = scmp.ne.s32.totalorder %s2599_s14, 0 }
 0x7c2   : > { %s1345_s24 = scalar_lea.sflag [#allocation7], %s1344_s29 }
 0x7c3   : > { %p1700_p5 = pnand %p2601_p3, %p2600_p13 }
 0x7c5   : > { %2012 = dma.done.wait (!%p1700_p5), %s1345_s24, 128  }
 0x7c6   : > { %2014 = vsyncadd (!%p1700_p5), %s1345_s24, 4294967168  ;;  %s31_s22 = sadd.s32 1, %s2037_s22   ;;  %s2602_s17 = smov %s2021_s18 }
 0x7c7   : > { %p28_p6 = scmp.ge.s32.totalorder %s31_s22, 4   ;;  %s2603_s18 = smov %s2025_s19 }
 0x7c8   : > { %s2604_s19 = smov %s2284_s16  ;;  %s2605_s20 = smov %s2033_s21 }
 0x7c9   : > { %s2606_s21 = smov %s2608_s30  ;;  %30 = sbr.rel (!%p28_p6) target bundleno = 18 (0x12), region = 162 }
 0x7d0   :  { %1350 = vsyncpa [#allocation6], 1 }
 0x7d1   :  { %1352 = vsyncpa [#allocation6 + $0x1], 1 }
 0x7d2   :  { %1353 = vsyncpa [#allocation9], 1 }
 0x7d3   :  { %1355 = vsyncpa [#allocation9 + $0x1], 1 }
 0x7d4   :  { %1356 = vsyncpa [#allocation12], 1 }
 0x7d5   :  { %1357 = vsyncpa [#allocation7], 1 }
 0x7d6   :  { %1359 = vsyncpa [#allocation7 + $0x1], 1 }

</bundles_post_ra>
